<compile_context>
chip_gen: v7x
topology: tpu7x:2x2x1
jax: 0.10.0
libtpu: 0.0.40
codegen_flags: <defaults>
</compile_context>

<pallas_src>
import numpy as np
import jax
import jax.numpy as jnp
from jax import lax
from jax.experimental import pallas as pl
from jax.experimental.pallas import tpu as pltpu

C1_K = 3          # first conv kernel size (c1_kernel_size)
C2_K = 2          # second conv kernel size (c2_kernel_size)
NUM_CLASSES = 10
BN_EPS = 1e-5
N_TILE_MAX = 2048  # batch tile (bf16 activations): VMEM-safe on v5e/v6e/v7x


def _round_up(x, m):
    return ((x + m - 1) // m) * m


# --------------------------- fused forward kernel ----------------------------
def lenet5_fused_kernel(x_ref, m1_ref, b1_ref, m2_ref, b2_ref, m3_ref, b3_ref,
                        m4_ref, b4_ref, m5_ref, b5_ref, o_ref):
    """Five chained lane-dense MXU matmuls with f32 bias+ReLU epilogues.

    x : (Nt, 128)  bf16                  flattened (1, 8, 8) input, zero-padded
    m1: (128, 640) b1: (1, 640)          conv1(pad=2,k=3) + BN1 folded
    m2: (640, 256) b2: (1, 256)          avgpool1 composed with conv2(k=2)+BN2
    m3: (256, 128) b3: (1, 128)          avgpool2 composed with fc
    m4: (128, 128) b4: (1, 128)          fc1
    m5: (128, 128) b5: (1, 128)          fc2
    o : (Nt, 128)  f32                   logits in cols [:num_classes]
    """
    def dense(h, m_ref, b_ref, relu):
        y = jnp.dot(h, m_ref[...], preferred_element_type=jnp.float32) + b_ref[...]
        return jnp.maximum(y, 0.0) if relu else y

    h = dense(x_ref[...], m1_ref, b1_ref, relu=True).astype(jnp.bfloat16)
    h = dense(h, m2_ref, b2_ref, relu=True).astype(jnp.bfloat16)
    h = dense(h, m3_ref, b3_ref, relu=True).astype(jnp.bfloat16)
    h = dense(h, m4_ref, b4_ref, relu=True).astype(jnp.bfloat16)
    o_ref[...] = dense(h, m5_ref, b5_ref, relu=False)


# ------------------- one-time parameter / matrix preparation -----------------
def _conv_matrix_indices(c_out, c_in, kh, kw, h, w, pad):
    """Static scatter indices for the dense conv-as-matrix (padding folded in)."""
    ho, wo = h + 2 * pad - kh + 1, w + 2 * pad - kw + 1
    rows, cols, widx = [], [], []
    for co in range(c_out):
        for ci in range(c_in):
            for ki in range(kh):
                for kj in range(kw):
                    for oi in range(ho):
                        for oj in range(wo):
                            ii, jj = oi + ki - pad, oj + kj - pad
                            if 0 <= ii < h and 0 <= jj < w:
                                rows.append(ci * h * w + ii * w + jj)
                                cols.append(co * ho * wo + oi * wo + oj)
                                widx.append(((co * c_in + ci) * kh + ki) * kw + kj)
    return (np.asarray(rows), np.asarray(cols), np.asarray(widx),
            (c_in * h * w, c_out * ho * wo), (ho, wo))


def _conv_as_matrix(w, h, wdt, pad):
    """(C_out,C_in,kh,kw) weights -> dense (C_in*H*W, C_out*Ho*Wo) matrix."""
    c_out, c_in, kh, kw = w.shape
    rows, cols, widx, shape, out_hw = _conv_matrix_indices(
        c_out, c_in, kh, kw, h, wdt, pad)
    m = jnp.zeros(shape, jnp.float32).at[rows, cols].add(w.reshape(-1)[widx])
    return m, out_hw


def _pool_matrix(c, h, w):
    """Constant (C*H*W, C*Ho*Wo) matrix for a 2x2/stride-2 average pool."""
    ho, wo = h // 2, w // 2
    m = np.zeros((c * h * w, c * ho * wo), np.float32)
    for ci in range(c):
        for pi in range(ho):
            for pj in range(wo):
                for a in range(2):
                    for b in range(2):
                        m[ci * h * w + (2 * pi + a) * w + (2 * pj + b),
                          ci * ho * wo + pi * wo + pj] = 0.25
    return m


def _fold_bn(bias, gamma, beta, mean, var):
    scale = gamma / jnp.sqrt(var + BN_EPS)
    shift = (bias - mean) * scale + beta
    return scale, shift


def _pad2(m, rows, cols):
    return jnp.pad(m, ((0, rows - m.shape[0]), (0, cols - m.shape[1])))


def prepare_lenet5(p, h, w):
    """Fold conv/BN/pool into five padded lane-dense matrices + f32 bias rows.

    Call ONCE per parameter set (it does scatter-adds and a 600x150x256
    composition matmul); reuse the returned pytree across forward calls.
    """
    hi = lax.Precision.HIGHEST  # keep weight-prep compositions exact in f32
    c_in = p['w1'].shape[1]
    k_in = _round_up(c_in * h * w, 128)        # 64 -> 128

    # layer1: conv1 (pad=2, k=3) + BN1 folded -> (64, 600) matrix + bias row.
    m1, (h1h, h1w) = _conv_as_matrix(p['w1'], h, w, pad=2)
    s1, sh1 = _fold_bn(p['b1'], p['bn1_gamma'], p['bn1_beta'],
                       p['bn1_mean'], p['bn1_var'])
    m1 = m1 * jnp.repeat(s1, h1h * h1w)[None, :]
    b1 = jnp.repeat(sh1, h1h * h1w)[None, :]
    n1p = _round_up(m1.shape[1], 128)          # 600 -> 640

    # pool1 composed into layer2: pool1 @ (conv2 + BN2) -> (600, 256) + bias.
    p1h, p1w = h1h // 2, h1w // 2
    pool1 = jnp.asarray(_pool_matrix(p['w1'].shape[0], h1h, h1w))
    c2m, (h2h, h2w) = _conv_as_matrix(p['w2'], p1h, p1w, pad=0)
    s2, sh2 = _fold_bn(p['b2'], p['bn2_gamma'], p['bn2_beta'],
                       p['bn2_mean'], p['bn2_var'])
    c2m = c2m * jnp.repeat(s2, h2h * h2w)[None, :]
    m2 = jnp.matmul(pool1, c2m, precision=hi)
    b2 = jnp.repeat(sh2, h2h * h2w)[None, :]
    n2p = _round_up(m2.shape[1], 128)          # 256 -> 256

    # pool2 composed into fc: pool2 @ wfc^T -> (256, 30) + bias row.
    pool2 = jnp.asarray(_pool_matrix(p['w2'].shape[0], h2h, h2w))
    m3 = jnp.matmul(pool2, p['wfc'].T, precision=hi)
    b3 = p['bfc'][None, :]
    n3p = _round_up(m3.shape[1], 128)          # 30 -> 128

    m4, b4 = p['wfc1'].T, p['bfc1'][None, :]   # (30, 15)
    n4p = _round_up(m4.shape[1], 128)          # 15 -> 128
    m5, b5 = p['wfc2'].T, p['bfc2'][None, :]   # (15, num_classes)
    n5p = _round_up(m5.shape[1], 128)          # 10 -> 128

    layers = (
        (_pad2(m1, k_in, n1p), _pad2(b1, 1, n1p)),
        (_pad2(m2, n1p, n2p), _pad2(b2, 1, n2p)),
        (_pad2(m3, n2p, n3p), _pad2(b3, 1, n3p)),
        (_pad2(m4, n3p, n4p), _pad2(b4, 1, n4p)),
        (_pad2(m5, n4p, n5p), _pad2(b5, 1, n5p)),
    )
    # Weights in bf16 (MXU operands), biases stay f32 (added to f32 accum).
    return tuple((m.astype(jnp.bfloat16), b.astype(jnp.float32))
                 for m, b in layers)


# --------------------------------- wrapper ------------------------------------
def lenet5_forward(x, layers, num_classes):
    """Forward pass. `layers` comes from prepare_lenet5 (computed once)."""
    n = x.shape[0]
    k_in = layers[0][0].shape[0]               # padded input width (128)
    n_out = layers[-1][0].shape[1]             # padded output width (128)

    # Lane-dense flat bf16 input, zero-padded in features and batch.
    x_flat = x.reshape(n, -1).astype(jnp.bfloat16)
    feat = x_flat.shape[1]
    # Tile so the parallel grid has >=2 steps when the batch allows (v7x has
    # two TensorCores), capped for VMEM.
    nt = min(N_TILE_MAX, max(8, _round_up(pl.cdiv(n, 2), 8)))
    n_pad = _round_up(n, nt)
    x_flat = jnp.pad(x_flat, ((0, n_pad - n), (0, k_in - feat)))

    args = [x_flat]
    in_specs = [pl.BlockSpec((nt, k_in), lambda i: (i, 0))]
    for m, b in layers:
        args += [m, b]
        # Constant index_map: weights/biases are DMA'd once and stay resident.
        in_specs += [pl.BlockSpec(m.shape, lambda i: (0, 0)),
                     pl.BlockSpec(b.shape, lambda i: (0, 0))]

    out = pl.pallas_call(
        lenet5_fused_kernel,
        out_shape=jax.ShapeDtypeStruct((n_pad, n_out), jnp.float32),
        grid=(n_pad // nt,),
        in_specs=in_specs,
        out_specs=pl.BlockSpec((nt, n_out), lambda i: (i, 0)),
        compiler_params=pltpu.CompilerParams(
            dimension_semantics=("parallel",),
            vmem_limit_bytes=32 * 1024 * 1024),
    )(*args)
    return out[:n, :num_classes]


# ---------- deterministic parameter init (shapes from LeNet5.__init__) -------
def init_params(key, num_classes=NUM_CLASSES):
    ks = jax.random.split(key, 20)

    def nrm(k, shape, scale=0.1):
        return scale * jax.random.normal(k, shape, jnp.float32)

    return {
        'w1': nrm(ks[0], (6, 1, C1_K, C1_K)),
        'b1': nrm(ks[1], (6,)),
        'bn1_gamma': 1.0 + nrm(ks[2], (6,)),
        'bn1_beta': nrm(ks[3], (6,)),
        'bn1_mean': nrm(ks[4], (6,)),
        'bn1_var': jax.random.uniform(ks[5], (6,), jnp.float32, 0.5, 1.5),
        'w2': nrm(ks[6], (16, 6, C2_K, C2_K)),
        'b2': nrm(ks[7], (16,)),
        'bn2_gamma': 1.0 + nrm(ks[8], (16,)),
        'bn2_beta': nrm(ks[9], (16,)),
        'bn2_mean': nrm(ks[10], (16,)),
        'bn2_var': jax.random.uniform(ks[11], (16,), jnp.float32, 0.5, 1.5),
        'wfc': nrm(ks[12], (30, 64)),
        'bfc': nrm(ks[13], (30,)),
        'wfc1': nrm(ks[14], (15, 30)),
        'bfc1': nrm(ks[15], (15,)),
        'wfc2': nrm(ks[16], (num_classes, 15)),
        'bfc2': nrm(ks[17], (num_classes,)),
    }


# ---------- pure-JAX reference for a sanity check ----------------------------
def reference_forward(x, p):
    def bn(y, g, b, m, v):
        return ((y - m[None, :, None, None])
                / jnp.sqrt(v[None, :, None, None] + BN_EPS)
                * g[None, :, None, None] + b[None, :, None, None])

    y = lax.conv_general_dilated(x, p['w1'], (1, 1), ((2, 2), (2, 2)),
                                 dimension_numbers=('NCHW', 'OIHW', 'NCHW'))
    y = y + p['b1'][None, :, None, None]
    y = jnp.maximum(bn(y, p['bn1_gamma'], p['bn1_beta'], p['bn1_mean'], p['bn1_var']), 0.0)
    y = lax.reduce_window(y, 0.0, lax.add, (1, 1, 2, 2), (1, 1, 2, 2), 'VALID') * 0.25
    y = lax.conv_general_dilated(y, p['w2'], (1, 1), ((0, 0), (0, 0)),
                                 dimension_numbers=('NCHW', 'OIHW', 'NCHW'))
    y = y + p['b2'][None, :, None, None]
    y = jnp.maximum(bn(y, p['bn2_gamma'], p['bn2_beta'], p['bn2_mean'], p['bn2_var']), 0.0)
    y = lax.reduce_window(y, 0.0, lax.add, (1, 1, 2, 2), (1, 1, 2, 2), 'VALID') * 0.25
    y = y.reshape(y.shape[0], -1)
    y = jnp.maximum(y @ p['wfc'].T + p['bfc'], 0.0)
    y = jnp.maximum(y @ p['wfc1'].T + p['bfc1'], 0.0)
    return y @ p['wfc2'].T + p['bfc2']


if __name__ == "__main__":
    key = jax.random.PRNGKey(0)
    kx, kp = jax.random.split(key)
    # 8x8 input => conv1(pad2,k3) 10x10 -> pool 5x5 -> conv2(k2) 4x4 -> pool 2x2
    # => 16*2*2 = 64, matching nn.Linear(64, 30).
    x = jax.random.normal(kx, (2, 1, 8, 8), jnp.float32)
    params = init_params(kp)

    # One-time weight folding (hoisted out of the per-call path).
    layers = jax.block_until_ready(prepare_lenet5(params, 8, 8))

    fwd = jax.jit(lenet5_forward, static_argnums=2)
    out = fwd(x, layers, NUM_CLASSES)
    out = jax.block_until_ready(out)

    ref = reference_forward(x, params)
    # Tolerance covers bf16 MXU operand rounding (same as default-precision f32).
    np.testing.assert_allclose(np.asarray(out), np.asarray(ref), rtol=2e-2, atol=2e-2)
    assert out.shape == (2, NUM_CLASSES) and out.dtype == jnp.float32

    print("KERNEL_OK")
</pallas_src>

<mosaic_0001>
module attributes {stable_mosaic.version = 11 : i64} {
  func.func @lenet5_fused_kernel(%arg0: i32, %arg1: memref<8x128xbf16, #tpu.memory_space<vmem>>, %arg2: memref<128x640xbf16, #tpu.memory_space<vmem>>, %arg3: memref<1x640xf32, #tpu.memory_space<vmem>>, %arg4: memref<640x256xbf16, #tpu.memory_space<vmem>>, %arg5: memref<1x256xf32, #tpu.memory_space<vmem>>, %arg6: memref<256x128xbf16, #tpu.memory_space<vmem>>, %arg7: memref<1x128xf32, #tpu.memory_space<vmem>>, %arg8: memref<128x128xbf16, #tpu.memory_space<vmem>>, %arg9: memref<1x128xf32, #tpu.memory_space<vmem>>, %arg10: memref<128x128xbf16, #tpu.memory_space<vmem>>, %arg11: memref<1x128xf32, #tpu.memory_space<vmem>>, %arg12: memref<8x128xf32, #tpu.memory_space<vmem>>) attributes {dimension_semantics = [#tpu.dimension_semantics<parallel>], iteration_bounds = array<i64: 1>, scalar_prefetch = 0 : i64, scratch_operands = 0 : i64, tpu.core_type = #tpu.core_type<tc>, window_params = [{transform_indices = @transform_0, window_bounds = array<i64: 8, 128>}, {pipeline_mode = #tpu.pipeline_mode<synchronous>, transform_indices = @transform_1, window_bounds = array<i64: 128, 640>}, {pipeline_mode = #tpu.pipeline_mode<synchronous>, transform_indices = @transform_2, window_bounds = array<i64: 1, 640>}, {pipeline_mode = #tpu.pipeline_mode<synchronous>, transform_indices = @transform_3, window_bounds = array<i64: 640, 256>}, {pipeline_mode = #tpu.pipeline_mode<synchronous>, transform_indices = @transform_4, window_bounds = array<i64: 1, 256>}, {pipeline_mode = #tpu.pipeline_mode<synchronous>, transform_indices = @transform_5, window_bounds = array<i64: 256, 128>}, {pipeline_mode = #tpu.pipeline_mode<synchronous>, transform_indices = @transform_6, window_bounds = array<i64: 1, 128>}, {pipeline_mode = #tpu.pipeline_mode<synchronous>, transform_indices = @transform_7, window_bounds = array<i64: 128, 128>}, {pipeline_mode = #tpu.pipeline_mode<synchronous>, transform_indices = @transform_8, window_bounds = array<i64: 1, 128>}, {pipeline_mode = #tpu.pipeline_mode<synchronous>, transform_indices = @transform_9, window_bounds = array<i64: 128, 128>}, {pipeline_mode = #tpu.pipeline_mode<synchronous>, transform_indices = @transform_10, window_bounds = array<i64: 1, 128>}, {transform_indices = @transform_11, window_bounds = array<i64: 8, 128>}]} {
    %c0 = arith.constant 0 : index
    %c0_0 = arith.constant 0 : index
    %0 = vector.load %arg1[%c0, %c0_0] : memref<8x128xbf16, #tpu.memory_space<vmem>>, vector<8x128xbf16>
    %c0_1 = arith.constant 0 : index
    %c0_2 = arith.constant 0 : index
    %1 = vector.load %arg2[%c0_1, %c0_2] : memref<128x640xbf16, #tpu.memory_space<vmem>>, vector<128x640xbf16>
    %cst = arith.constant dense<0.000000e+00> : vector<8x640xf32>
    %2 = tpu.matmul %0, %1, %cst {dimension_numbers = #tpu.dot_dimension_numbers<[1], [0], [0], [1], [0, 0, 1, 1], [], []>} : vector<8x128xbf16>, vector<128x640xbf16>, vector<8x640xf32> -> vector<8x640xf32>
    %c0_3 = arith.constant 0 : index
    %c0_4 = arith.constant 0 : index
    %3 = vector.load %arg3[%c0_3, %c0_4] : memref<1x640xf32, #tpu.memory_space<vmem>>, vector<1x640xf32>
    %4 = vector.broadcast %3 : vector<1x640xf32> to vector<8x640xf32>
    %5 = arith.addf %2, %4 : vector<8x640xf32>
    %cst_5 = arith.constant 0.000000e+00 : f32
    %6 = vector.broadcast %cst_5 : f32 to vector<8x640xf32>
    %7 = arith.maximumf %5, %6 : vector<8x640xf32>
    %8 = arith.truncf %7 : vector<8x640xf32> to vector<8x640xbf16>
    %c0_6 = arith.constant 0 : index
    %c0_7 = arith.constant 0 : index
    %9 = vector.load %arg4[%c0_6, %c0_7] : memref<640x256xbf16, #tpu.memory_space<vmem>>, vector<640x256xbf16>
    %cst_8 = arith.constant dense<0.000000e+00> : vector<8x256xf32>
    %10 = tpu.matmul %8, %9, %cst_8 {dimension_numbers = #tpu.dot_dimension_numbers<[1], [0], [0], [1], [0, 0, 1, 1], [], []>} : vector<8x640xbf16>, vector<640x256xbf16>, vector<8x256xf32> -> vector<8x256xf32>
    %c0_9 = arith.constant 0 : index
    %c0_10 = arith.constant 0 : index
    %11 = vector.load %arg5[%c0_9, %c0_10] : memref<1x256xf32, #tpu.memory_space<vmem>>, vector<1x256xf32>
    %12 = vector.broadcast %11 : vector<1x256xf32> to vector<8x256xf32>
    %13 = arith.addf %10, %12 : vector<8x256xf32>
    %cst_11 = arith.constant 0.000000e+00 : f32
    %14 = vector.broadcast %cst_11 : f32 to vector<8x256xf32>
    %15 = arith.maximumf %13, %14 : vector<8x256xf32>
    %16 = arith.truncf %15 : vector<8x256xf32> to vector<8x256xbf16>
    %c0_12 = arith.constant 0 : index
    %c0_13 = arith.constant 0 : index
    %17 = vector.load %arg6[%c0_12, %c0_13] : memref<256x128xbf16, #tpu.memory_space<vmem>>, vector<256x128xbf16>
    %cst_14 = arith.constant dense<0.000000e+00> : vector<8x128xf32>
    %18 = tpu.matmul %16, %17, %cst_14 {dimension_numbers = #tpu.dot_dimension_numbers<[1], [0], [0], [1], [0, 0, 1, 1], [], []>} : vector<8x256xbf16>, vector<256x128xbf16>, vector<8x128xf32> -> vector<8x128xf32>
    %c0_15 = arith.constant 0 : index
    %c0_16 = arith.constant 0 : index
    %19 = vector.load %arg7[%c0_15, %c0_16] : memref<1x128xf32, #tpu.memory_space<vmem>>, vector<1x128xf32>
    %20 = vector.broadcast %19 : vector<1x128xf32> to vector<8x128xf32>
    %21 = arith.addf %18, %20 : vector<8x128xf32>
    %cst_17 = arith.constant 0.000000e+00 : f32
    %22 = vector.broadcast %cst_17 : f32 to vector<8x128xf32>
    %23 = arith.maximumf %21, %22 : vector<8x128xf32>
    %24 = arith.truncf %23 : vector<8x128xf32> to vector<8x128xbf16>
    %c0_18 = arith.constant 0 : index
    %c0_19 = arith.constant 0 : index
    %25 = vector.load %arg8[%c0_18, %c0_19] : memref<128x128xbf16, #tpu.memory_space<vmem>>, vector<128x128xbf16>
    %cst_20 = arith.constant dense<0.000000e+00> : vector<8x128xf32>
    %26 = tpu.matmul %24, %25, %cst_20 {dimension_numbers = #tpu.dot_dimension_numbers<[1], [0], [0], [1], [0, 0, 1, 1], [], []>} : vector<8x128xbf16>, vector<128x128xbf16>, vector<8x128xf32> -> vector<8x128xf32>
    %c0_21 = arith.constant 0 : index
    %c0_22 = arith.constant 0 : index
    %27 = vector.load %arg9[%c0_21, %c0_22] : memref<1x128xf32, #tpu.memory_space<vmem>>, vector<1x128xf32>
    %28 = vector.broadcast %27 : vector<1x128xf32> to vector<8x128xf32>
    %29 = arith.addf %26, %28 : vector<8x128xf32>
    %cst_23 = arith.constant 0.000000e+00 : f32
    %30 = vector.broadcast %cst_23 : f32 to vector<8x128xf32>
    %31 = arith.maximumf %29, %30 : vector<8x128xf32>
    %32 = arith.truncf %31 : vector<8x128xf32> to vector<8x128xbf16>
    %c0_24 = arith.constant 0 : index
    %c0_25 = arith.constant 0 : index
    %33 = vector.load %arg10[%c0_24, %c0_25] : memref<128x128xbf16, #tpu.memory_space<vmem>>, vector<128x128xbf16>
    %cst_26 = arith.constant dense<0.000000e+00> : vector<8x128xf32>
    %34 = tpu.matmul %32, %33, %cst_26 {dimension_numbers = #tpu.dot_dimension_numbers<[1], [0], [0], [1], [0, 0, 1, 1], [], []>} : vector<8x128xbf16>, vector<128x128xbf16>, vector<8x128xf32> -> vector<8x128xf32>
    %c0_27 = arith.constant 0 : index
    %c0_28 = arith.constant 0 : index
    %35 = vector.load %arg11[%c0_27, %c0_28] : memref<1x128xf32, #tpu.memory_space<vmem>>, vector<1x128xf32>
    %36 = vector.broadcast %35 : vector<1x128xf32> to vector<8x128xf32>
    %37 = arith.addf %34, %36 : vector<8x128xf32>
    %c0_29 = arith.constant 0 : index
    %c0_30 = arith.constant 0 : index
    %38 = vector.load %arg12[%c0_29, %c0_30] : memref<8x128xf32, #tpu.memory_space<vmem>>, vector<8x128xf32>
    tpu.vector_store %arg12[%c0_29, %c0_30], %37 {strides = array<i32>} : memref<8x128xf32, #tpu.memory_space<vmem>>, vector<8x128xf32>,
    return
  }
  func.func @transform_0(%arg0: i32) -> (i32, i32) {
    %c0_i32 = arith.constant 0 : i32
    %c0_i32_0 = arith.constant 0 : i32
    return %arg0, %c0_i32 : i32, i32
  }
  func.func @transform_1(%arg0: i32) -> (i32, i32) {
    %c0_i32 = arith.constant 0 : i32
    %c0_i32_0 = arith.constant 0 : i32
    %c0_i32_1 = arith.constant 0 : i32
    return %c0_i32, %c0_i32_0 : i32, i32
  }
  func.func @transform_2(%arg0: i32) -> (i32, i32) {
    %c0_i32 = arith.constant 0 : i32
    %c0_i32_0 = arith.constant 0 : i32
    %c0_i32_1 = arith.constant 0 : i32
    return %c0_i32, %c0_i32_0 : i32, i32
  }
  func.func @transform_3(%arg0: i32) -> (i32, i32) {
    %c0_i32 = arith.constant 0 : i32
    %c0_i32_0 = arith.constant 0 : i32
    %c0_i32_1 = arith.constant 0 : i32
    return %c0_i32, %c0_i32_0 : i32, i32
  }
  func.func @transform_4(%arg0: i32) -> (i32, i32) {
    %c0_i32 = arith.constant 0 : i32
    %c0_i32_0 = arith.constant 0 : i32
    %c0_i32_1 = arith.constant 0 : i32
    return %c0_i32, %c0_i32_0 : i32, i32
  }
  func.func @transform_5(%arg0: i32) -> (i32, i32) {
    %c0_i32 = arith.constant 0 : i32
    %c0_i32_0 = arith.constant 0 : i32
    %c0_i32_1 = arith.constant 0 : i32
    return %c0_i32, %c0_i32_0 : i32, i32
  }
  func.func @transform_6(%arg0: i32) -> (i32, i32) {
    %c0_i32 = arith.constant 0 : i32
    %c0_i32_0 = arith.constant 0 : i32
    %c0_i32_1 = arith.constant 0 : i32
    return %c0_i32, %c0_i32_0 : i32, i32
  }
  func.func @transform_7(%arg0: i32) -> (i32, i32) {
    %c0_i32 = arith.constant 0 : i32
    %c0_i32_0 = arith.constant 0 : i32
    %c0_i32_1 = arith.constant 0 : i32
    return %c0_i32, %c0_i32_0 : i32, i32
  }
  func.func @transform_8(%arg0: i32) -> (i32, i32) {
    %c0_i32 = arith.constant 0 : i32
    %c0_i32_0 = arith.constant 0 : i32
    %c0_i32_1 = arith.constant 0 : i32
    return %c0_i32, %c0_i32_0 : i32, i32
  }
  func.func @transform_9(%arg0: i32) -> (i32, i32) {
    %c0_i32 = arith.constant 0 : i32
    %c0_i32_0 = arith.constant 0 : i32
    %c0_i32_1 = arith.constant 0 : i32
    return %c0_i32, %c0_i32_0 : i32, i32
  }
  func.func @transform_10(%arg0: i32) -> (i32, i32) {
    %c0_i32 = arith.constant 0 : i32
    %c0_i32_0 = arith.constant 0 : i32
    %c0_i32_1 = arith.constant 0 : i32
    return %c0_i32, %c0_i32_0 : i32, i32
  }
  func.func @transform_11(%arg0: i32) -> (i32, i32) {
    %c0_i32 = arith.constant 0 : i32
    %c0_i32_0 = arith.constant 0 : i32
    return %arg0, %c0_i32 : i32, i32
  }
}

</mosaic_0001>

<bundles_post_ra>
// kernel: lenet5_forward.1
= control target key start
LH: loop header
LB: loop body
LE: loop exit
PB: predicated region body
PF: predicated region fallthrough
CT: control target
= control target key end

     0   :  { %16 = vsyncpa [#allocation3], 0  ;;  %s2448_s0 = inlined_call_operand.vmem [shape: bf16[8,128], index: 0, kind: input, shape index: {}]   ;;  %s2449_s1 = inlined_call_operand.hbm [shape: bf16[128,640], index: 1, kind: input, shape index: {}]   ;;  %s2450_s2 = inlined_call_operand.hbm [shape: f32[1,640], index: 2, kind: input, shape index: {}]   ;;  %s2451_s3 = inlined_call_operand.hbm [shape: bf16[640,256], index: 3, kind: input, shape index: {}]   ;;  %s2452_s4 = inlined_call_operand.hbm [shape: f32[1,256], index: 4, kind: input, shape index: {}]   ;;  %s2453_s5 = inlined_call_operand.hbm [shape: bf16[256,128], index: 5, kind: input, shape index: {}]   ;;  %s2454_s6 = inlined_call_operand.vmem [shape: f32[1,128], index: 6, kind: input, shape index: {}]   ;;  %s2455_s7 = inlined_call_operand.vmem [shape: bf16[128,128], index: 7, kind: input, shape index: {}]   ;;  %s2456_s8 = inlined_call_operand.vmem [shape: f32[1,128], index: 8, kind: input, shape index: {}]   ;;  %s2457_s9 = inlined_call_operand.hbm [shape: bf16[128,128], index: 9, kind: input, shape index: {}]   ;;  %s2458_s10 = inlined_call_operand.vmem [shape: f32[1,128], index: 10, kind: input, shape index: {}]   ;;  %s2459_s11 = inlined_call_operand.vmem [shape: f32[8,128], index: 11, kind: output, shape index: {}]  }
   0x1   :  { %17 = vsyncpa [#allocation5], 0 }
   0x2   :  { %18 = vsyncpa [#allocation8], 0 }
   0x3   :  { %19 = vsyncpa [#allocation11], 0  ;;  %s2199_s17 = smov [#allocation4]   ;;  %s2200_s19 = smov [#allocation7]  }
   0x4   :  { %s40_s18 = sshll.u32 %s2199_s17, 4  ;;  %s62_s20 = sshll.u32 %s2200_s19, 4  ;;  %s41_s18 = int_to_ptr.vmem [resolvable:$true] %s40_s18  ;;  %s63_s20 = int_to_ptr.vmem [resolvable:$true] %s62_s20 }
   0x5   :  { %s2059_s23 = scalar_lea.hbm %s2450_s2, 80 }
   0x6   :  { %p2060_p0 = scmp.ne.s32.totalorder %s2450_s2, %s2059_s23  ;;  %p2063_p1 = scmp.lt.u32.totalorder %s2059_s23, %s2450_s2 }
   0x8   :  { %p2065_p2 = pnand %p2063_p1, %p2060_p0 }
   0xa   :  { %2068 = shalt.err (!%p2065_p2)
}
   0xb   :  { %s2069_s28 = scalar_lea.vmem %s41_s18, 80  ;;  %s2073_s29 = scalar_lea.vmem %s41_s18, 96 }
   0xc   :  { %p2070_p3 = scmp.ne.s32.totalorder %s41_s18, %s2069_s28  ;;  %p2074_p4 = scmp.lt.s32.totalorder %s41_s18, %s41_s18 }
   0xd   :  { %p2075_p5 = scmp.lt.s32.totalorder %s2073_s29, %s2069_s28 }
   0xf   :  { %p2076_p6 = por %p2075_p5, %p2074_p4 }
  0x11   :  { %p2077_p7 = pnand %p2076_p6, %p2070_p3 }
  0x13   :  { %2080 = shalt.err (!%p2077_p7)
}
  0x14   :  { %43 = dma.hbm_to_vmem [thread:$0]  %s2450_s2, 80, %s41_s18, [#allocation5]  }
  0x15   :  { %s2081_s15 = scalar_lea.hbm %s2452_s4, 32 }
  0x16   :  { %p2082_p8 = scmp.ne.s32.totalorder %s2452_s4, %s2081_s15  ;;  %p2085_p9 = scmp.lt.u32.totalorder %s2081_s15, %s2452_s4 }
  0x18   :  { %p2087_p10 = pnand %p2085_p9, %p2082_p8 }
  0x1a   :  { %2090 = shalt.err (!%p2087_p10)
}
  0x1b   :  { %s2091_s22 = scalar_lea.vmem %s63_s20, 32  ;;  %p2096_p12 = scmp.lt.s32.totalorder %s63_s20, %s63_s20 }
  0x1c   :  { %p2092_p11 = scmp.ne.s32.totalorder %s63_s20, %s2091_s22  ;;  %p2097_p13 = scmp.lt.s32.totalorder %s2091_s22, %s2091_s22 }
  0x1e   :  { %p2098_p0 = por %p2097_p13, %p2096_p12 }
  0x20   :  { %p2099_p1 = pnand %p2098_p0, %p2092_p11 }
  0x22   :  { %2102 = shalt.err (!%p2099_p1)
}
  0x23   :  { %65 = dma.hbm_to_vmem [thread:$0]  %s2452_s4, 32, %s63_s20, [#allocation8]  }
  0x24   :  { %s2201_s23 = smov [#allocation2]   ;;  %s2103_s27 = scalar_lea.hbm %s2449_s1, 5120 }
  0x25   :  { %s27_s24 = sshll.u32 %s2201_s23, 4  ;;  %p2104_p2 = scmp.ne.s32.totalorder %s2449_s1, %s2103_s27  ;;  %s28_s24 = int_to_ptr.vmem [resolvable:$true] %s27_s24 }
  0x26   :  { %p2107_p3 = scmp.lt.u32.totalorder %s2103_s27, %s2449_s1 }
  0x28   :  { %p2109_p4 = pnand %p2107_p3, %p2104_p2 }
  0x2a   :  { %2112 = shalt.err (!%p2109_p4)
}
  0x2b   :  { %s2113_s13 = scalar_lea.vmem %s28_s24, 5120  ;;  %p2118_p6 = scmp.lt.s32.totalorder %s28_s24, %s28_s24 }
  0x2c   :  { %p2114_p5 = scmp.ne.s32.totalorder %s28_s24, %s2113_s13  ;;  %p2119_p7 = scmp.lt.s32.totalorder %s2113_s13, %s2113_s13 }
  0x2e   :  { %p2120_p8 = por %p2119_p7, %p2118_p6 }
  0x30   :  { %p2121_p9 = pnand %p2120_p8, %p2114_p5 }
  0x32   :  { %2124 = shalt.err (!%p2121_p9)
}
  0x33   :  { %s2202_s4 = smov 320   ;;  %s2203_s20 = smov 20  }
  0x34   :  { %33 = dma.hbm_to_vmem [thread:$0]  %s2449_s1, 5120, %s28_s24, [#allocation3], %s2202_s4, %s2202_s4, %s2203_s20  }
  0x35   :  { %s2204_s16 = smov [#allocation6]   ;;  %s2125_s22 = scalar_lea.hbm %s2451_s3, 10240 }
  0x36   :  { %s49_s17 = sshll.u32 %s2204_s16, 4  ;;  %p2126_p10 = scmp.ne.s32.totalorder %s2451_s3, %s2125_s22  ;;  %s50_s17 = int_to_ptr.vmem [resolvable:$true] %s49_s17 }
  0x37   :  { %p2129_p11 = scmp.lt.u32.totalorder %s2125_s22, %s2451_s3 }
  0x39   :  { %p2131_p12 = pnand %p2129_p11, %p2126_p10 }
  0x3b   :  { %2134 = shalt.err (!%p2131_p12)
}
  0x3c   :  { %s2135_s26 = scalar_lea.vmem %s50_s17, 10240  ;;  %p2140_p0 = scmp.lt.s32.totalorder %s50_s17, %s50_s17 }
  0x3d   :  { %p2136_p13 = scmp.ne.s32.totalorder %s50_s17, %s2135_s26  ;;  %p2141_p1 = scmp.lt.s32.totalorder %s2135_s26, %s2135_s26 }
  0x3f   :  { %p2142_p2 = por %p2141_p1, %p2140_p0 }
  0x41   :  { %p2143_p3 = pnand %p2142_p2, %p2136_p13 }
  0x43   :  { %2146 = shalt.err (!%p2143_p3)
}
  0x44   :  { %s2205_s1 = smov 128   ;;  %s2206_s24 = smov 8  }
  0x45   :  { %55 = dma.hbm_to_vmem [thread:$0]  %s2451_s3, 10240, %s50_s17, [#allocation5], %s2205_s1, %s2205_s1, %s2206_s24  }
  0x46   :  { %s2207_s29 = smov [#allocation9]   ;;  %s2147_s4 = scalar_lea.hbm %s2453_s5, 2048 }
  0x47   :  { %s71_s30 = sshll.u32 %s2207_s29, 4  ;;  %p2148_p4 = scmp.ne.s32.totalorder %s2453_s5, %s2147_s4  ;;  %s72_s30 = int_to_ptr.vmem [resolvable:$true] %s71_s30 }
  0x48   :  { %p2151_p5 = scmp.lt.u32.totalorder %s2147_s4, %s2453_s5 }
  0x4a   :  { %p2153_p6 = pnand %p2151_p5, %p2148_p4 }
  0x4c   :  { %2156 = shalt.err (!%p2153_p6)
}
  0x4d   :  { %s2157_s19 = scalar_lea.vmem %s72_s30, 2048  ;;  %p2162_p8 = scmp.lt.s32.totalorder %s72_s30, %s72_s30 }
  0x4e   :  { %p2158_p7 = scmp.ne.s32.totalorder %s72_s30, %s2157_s19  ;;  %p2163_p9 = scmp.lt.s32.totalorder %s2157_s19, %s2157_s19 }
  0x50   :  { %p2164_p10 = por %p2163_p9, %p2162_p8 }
  0x52   :  { %p2165_p11 = pnand %p2164_p10, %p2158_p7 }
  0x54   :  { %2168 = shalt.err (!%p2165_p11)
}
  0x55   :  { %s2208_s3 = smov 64   ;;  %s2209_s17 = smov 4  }
  0x56   :  { %77 = dma.hbm_to_vmem [thread:$0]  %s2453_s5, 2048, %s72_s30, [#allocation8], %s2208_s3, %s2208_s3, %s2209_s17  }
  0x57   :  { %s2210_s2 = smov [#allocation10]   ;;  %s2169_s26 = scalar_lea.hbm %s2457_s9, 1024 }
  0x58   :  { %s89_s18 = sshll.u32 %s2210_s2, 4  ;;  %p2170_p12 = scmp.ne.s32.totalorder %s2457_s9, %s2169_s26  ;;  %s90_s18 = int_to_ptr.vmem [resolvable:$true] %s89_s18 }
  0x59   :  { %p2173_p13 = scmp.lt.u32.totalorder %s2169_s26, %s2457_s9 }
  0x5b   :  { %p2175_p0 = pnand %p2173_p13, %p2170_p12 }
  0x5d   :  { %2178 = shalt.err (!%p2175_p0)
}
  0x5e   :  { %s2179_s29 = scalar_lea.vmem %s90_s18, 1024  ;;  %p2184_p2 = scmp.lt.s32.totalorder %s90_s18, %s90_s18 }
  0x5f   :  { %p2180_p1 = scmp.ne.s32.totalorder %s90_s18, %s2179_s29  ;;  %p2185_p3 = scmp.lt.s32.totalorder %s2179_s29, %s2179_s29 }
  0x61   :  { %p2186_p4 = por %p2185_p3, %p2184_p2 }
  0x63   :  { %p2187_p5 = pnand %p2186_p4, %p2180_p1 }
  0x65   :  { %2190 = shalt.err (!%p2187_p5)
}
  0x66   :  { %95 = dma.hbm_to_vmem [thread:$0]  %s2457_s9, 1024, %s90_s18, [#allocation11], %s2208_s3, %s2208_s3, %s2209_s17  }
  0x67   :  { %2191 = dma.done.wait [#allocation3], 5120  }
  0x68   :  { %2192 = vsyncadd [#allocation3], 4294962176 }
  0x69   :  { %2193 = dma.done.wait [#allocation5], 10320  }
  0x6a   :  { %2194 = vsyncadd [#allocation5], 4294956976 }
  0x6b   :  { %2195 = dma.done.wait [#allocation8], 2080  }
  0x6c   :  { %2196 = vsyncadd [#allocation8], 4294965216 }
  0x6d   :  { %2197 = dma.done.wait [#allocation11], 1024  }
  0x6e   :  { %2198 = vsyncadd [#allocation11], 4294966272  ;;  %v2211_v0 = vmov 0   ;;  %v1851_v1 = vld [vmem:[#allocation2 + $0x4] ss:$20 sps:$4 sm:$0xff]   ;;  %v2212_v32 = vmov 0.0  }
  0x6f   :  { %433 = vmatprep.mubr.bf16.mxu0 %v2211_v0  ;;  %474 = vmatprep.mubr.bf16.mxu1 %v2211_v0  ;;  %v1853_v2 = vld [vmem:[#allocation2] ss:$20 sps:$4 sm:$0xff]   ;;  %v1856_v4 = vld [vmem:[#allocation2 + $0x28] ss:$20 sps:$4 sm:$0xff]   ;;  %v1859_v6 = vld [vmem:[#allocation2 + $0x50] ss:$20 sps:$4 sm:$0xff]  }
  0x70   :  { %401 = vmatprep.subr.bf16.mxu0 %v1851_v1  ;;  %v1854_v3 = vld [vmem:[#allocation2 + $0x2c] ss:$20 sps:$4 sm:$0xff]   ;;  %v1857_v5 = vld [vmem:[#allocation2 + $0x54] ss:$20 sps:$4 sm:$0xff]   ;;  %v1860_v7 = vld [vmem:[#allocation2 + $0x7c] ss:$20 sps:$4 sm:$0xff]  }
  0x71   :  { %402 = vmatpush1.bf16.msra.mxu0 %v1853_v2  ;;  %v1862_v8 = vld [vmem:[#allocation2 + $0x78] ss:$20 sps:$4 sm:$0xff]   ;;  %v1877_v11 = vld [vmem:[#allocation2 + $0x8] ss:$20 sps:$4 sm:$0xff]   ;;  %v1865_v13 = vld [vmem:[#allocation2 + $0xa0] ss:$20 sps:$4 sm:$0xff]  }
  0x72   :  { %403 = vmatprep.subr.bf16.mxu0 %v1854_v3  ;;  %v1863_v9 = vld [vmem:[#allocation2 + $0xa4] ss:$20 sps:$4 sm:$0xff]   ;;  %v1875_v10 = vld [vmem:[#allocation2 + $0xc] ss:$20 sps:$4 sm:$0xff]   ;;  %v1878_v12 = vld [vmem:[#allocation2 + $0x34] ss:$20 sps:$4 sm:$0xff]  }
  0x73   :  { %442 = vmatprep.subr.bf16.mxu1 %v1875_v10  ;;  %v1880_v14 = vld [vmem:[#allocation2 + $0x30] ss:$20 sps:$4 sm:$0xff]   ;;  %v1866_v16 = vld [vmem:[#allocation2 + $0xcc] ss:$20 sps:$4 sm:$0xff]   ;;  %v1868_v17 = vld [vmem:[#allocation2 + $0xc8] ss:$20 sps:$4 sm:$0xff]  }
  0x74   :  { %443 = vmatpush1.bf16.msra.mxu1 %v1877_v11  ;;  %v1881_v15 = vld [vmem:[#allocation2 + $0x5c] ss:$20 sps:$4 sm:$0xff]   ;;  %v1883_v18 = vld [vmem:[#allocation2 + $0x58] ss:$20 sps:$4 sm:$0xff]   ;;  %v1869_v20 = vld [vmem:[#allocation2 + $0xf4] ss:$20 sps:$4 sm:$0xff]  }
  0x75   :  { %404 = vmatpush1.bf16.msra.mxu0 %v1856_v4  ;;  %444 = vmatprep.subr.bf16.mxu1 %v1878_v12  ;;  %v1884_v19 = vld [vmem:[#allocation2 + $0x84] ss:$20 sps:$4 sm:$0xff]   ;;  %v1886_v22 = vld [vmem:[#allocation2 + $0x80] ss:$20 sps:$4 sm:$0xff]   ;;  %v1872_v24 = vld [vmem:[#allocation2 + $0x11c] ss:$20 sps:$4 sm:$0xff]  }
  0x76   :  { %405 = vmatprep.subr.bf16.mxu0 %v1857_v5  ;;  %v1871_v21 = vld [vmem:[#allocation2 + $0xf0] ss:$20 sps:$4 sm:$0xff]   ;;  %v1887_v23 = vld [vmem:[#allocation2 + $0xac] ss:$20 sps:$4 sm:$0xff]   ;;  %v1889_v26 = vld [vmem:[#allocation2 + $0xa8] ss:$20 sps:$4 sm:$0xff]  }
  0x77   :  { %v1874_v25 = vld [vmem:[#allocation2 + $0x118] ss:$20 sps:$4 sm:$0xff]   ;;  %v1890_v27 = vld [vmem:[#allocation2 + $0xd4] ss:$20 sps:$4 sm:$0xff]   ;;  %v2351_v28 = vld [vmem:[%s2448_s0] sm:$0xf] }
  0x78   :  { %445 = vmatpush1.bf16.msra.mxu1 %v1880_v14  ;;  %v1892_v29 = vld [vmem:[#allocation2 + $0xd0] ss:$20 sps:$4 sm:$0xff]   ;;  %v1895_v33 = vld [vmem:[#allocation2 + $0xf8] ss:$20 sps:$4 sm:$0xff]   ;;  %vm2213_vm0 = vmmov 0  }
  0x79   :  { %406 = vmatpush1.bf16.msra.mxu0 %v1859_v6  ;;  %446 = vmatprep.subr.bf16.mxu1 %v1881_v15  ;;  %v1893_v30 = vld [vmem:[#allocation2 + $0xfc] ss:$20 sps:$4 sm:$0xff]   ;;  %v1896_v34 = vld [vmem:[#allocation2 + $0x124] ss:$20 sps:$4 sm:$0xff]   ;;  %v1898_v36 = vld [vmem:[#allocation2 + $0x120] ss:$20 sps:$4 sm:$0xff]  }
  0x7a   :  { %407 = vmatprep.subr.bf16.mxu0 %v1860_v7  ;;  %v1899_v31 = vld [vmem:[#allocation2 + $0x10] ss:$20 sps:$4 sm:$0xff]   ;;  %v1900_v35 = vld [vmem:[#allocation2 + $0x38] ss:$20 sps:$4 sm:$0xff]   ;;  %v1901_v37 = vld [vmem:[#allocation2 + $0x60] ss:$20 sps:$4 sm:$0xff]  }
  0x7b   :  { %v1909_v38 = vld [vmem:[#allocation6 + $0x4] ss:$8 sps:$4 sm:$0xff]   ;;  %v1907_v40 = vld [vmem:[#allocation6] ss:$8 sps:$4 sm:$0xff]   ;;  %v1912_v41 = vld [vmem:[#allocation6 + $0x14] ss:$8 sps:$4 sm:$0xff]  }
  0x7c   :  { %447 = vmatpush1.bf16.msra.mxu1 %v1883_v18  ;;  %v1902_v39 = vld [vmem:[#allocation2 + $0x88] ss:$20 sps:$4 sm:$0xff]   ;;  %v1903_v42 = vld [vmem:[#allocation2 + $0xb0] ss:$20 sps:$4 sm:$0xff]   ;;  %v1904_v46 = vld [vmem:[#allocation2 + $0xd8] ss:$20 sps:$4 sm:$0xff]  }
  0x7d   :  { %408 = vmatpush1.bf16.msra.mxu0 %v1862_v8  ;;  %448 = vmatprep.subr.bf16.mxu1 %v1884_v19  ;;  %v1910_v43 = vld [vmem:[#allocation6 + $0x10] ss:$8 sps:$4 sm:$0xff]   ;;  %v1915_v44 = vld [vmem:[#allocation6 + $0x24] ss:$8 sps:$4 sm:$0xff]   ;;  %v1913_v45 = vld [vmem:[#allocation6 + $0x20] ss:$8 sps:$4 sm:$0xff]   ;;  %v168_v19 = vlaneseq }
  0x7e   :  { %409 = vmatprep.subr.bf16.mxu0 %v1863_v9  ;;  %v1918_v47 = vld [vmem:[#allocation6 + $0x34] ss:$8 sps:$4 sm:$0xff]   ;;  %v1916_v48 = vld [vmem:[#allocation6 + $0x30] ss:$8 sps:$4 sm:$0xff]   ;;  %v1921_v50 = vld [vmem:[#allocation6 + $0x44] ss:$8 sps:$4 sm:$0xff]  }
  0x7f   :  { %v1905_v49 = vld [vmem:[#allocation2 + $0x100] ss:$20 sps:$4 sm:$0xff]   ;;  %v1919_v51 = vld [vmem:[#allocation6 + $0x40] ss:$8 sps:$4 sm:$0xff]   ;;  %v2032_v18 = vld [vmem:[#allocation9 + $0x10] sm:$0xff]  }
  0x80   :  { %449 = vmatpush1.bf16.msra.mxu1 %v1886_v22  ;;  %v1906_v52 = vld [vmem:[#allocation2 + $0x128] ss:$20 sps:$4 sm:$0xff]   ;;  %v2029_v15 = vld [vmem:[#allocation9 + $0x48] sm:$0xff]   ;;  %v2366_v22 = vshrl.u32 %v168_v19, 7 }
  0x81   :  { %410 = vmatpush1.bf16.msra.mxu0 %v1865_v13  ;;  %450 = vmatprep.subr.bf16.mxu1 %v1887_v23  ;;  %v1924_v53 = vld [vmem:[#allocation6 + $0x54] ss:$8 sps:$4 sm:$0xff]   ;;  %v1922_v54 = vld [vmem:[#allocation6 + $0x50] ss:$8 sps:$4 sm:$0xff]   ;;  %v1927_v55 = vld [vmem:[#allocation6 + $0x64] ss:$8 sps:$4 sm:$0xff]  }
  0x82   :  { %411 = vmatprep.subr.bf16.mxu0 %v1866_v16  ;;  %v1925_v56 = vld [vmem:[#allocation6 + $0x60] ss:$8 sps:$4 sm:$0xff]   ;;  %v1930_v57 = vld [vmem:[#allocation6 + $0x74] ss:$8 sps:$4 sm:$0xff]   ;;  %v1928_v58 = vld [vmem:[#allocation6 + $0x70] ss:$8 sps:$4 sm:$0xff]  }
  0x83   :  { %v1933_v59 = vld [vmem:[#allocation6 + $0x84] ss:$8 sps:$4 sm:$0xff]   ;;  %v1931_v60 = vld [vmem:[#allocation6 + $0x80] ss:$8 sps:$4 sm:$0xff]   ;;  %v1936_v61 = vld [vmem:[#allocation6 + $0x94] ss:$8 sps:$4 sm:$0xff]  }
  0x84   :  { %451 = vmatpush1.bf16.msra.mxu1 %v1889_v26  ;;  %v1934_v62 = vld [vmem:[#allocation6 + $0x90] ss:$8 sps:$4 sm:$0xff]   ;;  %v1939_v63 = vld [vmem:[#allocation6 + $0xa4] ss:$8 sps:$4 sm:$0xff]   ;;  %v1937_v1 = vld [vmem:[#allocation6 + $0xa0] ss:$8 sps:$4 sm:$0xff]  }
  0x85   :  { %412 = vmatpush1.bf16.msra.mxu0 %v1868_v17  ;;  %452 = vmatprep.subr.bf16.mxu1 %v1890_v27  ;;  %v1942_v2 = vld [vmem:[#allocation6 + $0xb4] ss:$8 sps:$4 sm:$0xff]   ;;  %v1940_v3 = vld [vmem:[#allocation6 + $0xb0] ss:$8 sps:$4 sm:$0xff]   ;;  %v1945_v4 = vld [vmem:[#allocation6 + $0xc4] ss:$8 sps:$4 sm:$0xff]  }
  0x86   :  { %413 = vmatprep.subr.bf16.mxu0 %v1869_v20  ;;  %v1943_v5 = vld [vmem:[#allocation6 + $0xc0] ss:$8 sps:$4 sm:$0xff]   ;;  %v1948_v6 = vld [vmem:[#allocation6 + $0xd4] ss:$8 sps:$4 sm:$0xff]   ;;  %v1946_v7 = vld [vmem:[#allocation6 + $0xd0] ss:$8 sps:$4 sm:$0xff]  }
  0x87   :  { %v1951_v8 = vld [vmem:[#allocation6 + $0xe4] ss:$8 sps:$4 sm:$0xff]   ;;  %v1949_v9 = vld [vmem:[#allocation6 + $0xe0] ss:$8 sps:$4 sm:$0xff]   ;;  %v1954_v10 = vld [vmem:[#allocation6 + $0xf4] ss:$8 sps:$4 sm:$0xff]  }
  0x88   :  { %453 = vmatpush1.bf16.msra.mxu1 %v1892_v29  ;;  %v1952_v11 = vld [vmem:[#allocation6 + $0xf0] ss:$8 sps:$4 sm:$0xff]   ;;  %v1957_v12 = vld [vmem:[#allocation6 + $0x104] ss:$8 sps:$4 sm:$0xff]   ;;  %v1996_v19 = vld [vmem:[#allocation6 + $0x1d4] ss:$8 sps:$4 sm:$0xff]  }
  0x89   :  { %414 = vmatpush1.bf16.msra.mxu0 %v1871_v21  ;;  %454 = vmatprep.subr.bf16.mxu1 %v1893_v30  ;;  %v2027_v13 = vld [vmem:[#allocation9 + $0x40] sm:$0xff]   ;;  %v2030_v16 = vld [vmem:[#allocation9 + $0x8] sm:$0xff]   ;;  %v2031_v17 = vld [vmem:[#allocation9 + $0x50] sm:$0xff]  }
  0x8a   :  { %415 = vmatprep.subr.bf16.mxu0 %v1872_v24  ;;  %v2028_v14 = vld [vmem:[#allocation9] sm:$0xff]   ;;  %v2033_v20 = vld [vmem:[#allocation9 + $0x58] sm:$0xff]   ;;  %v2037_v26 = vld [vmem:[#allocation9 + $0x68] sm:$0xff]  }
  0x8b   :  { %v2034_v21 = vld [vmem:[#allocation9 + $0x18] sm:$0xff]   ;;  %v2035_v23 = vld [vmem:[#allocation9 + $0x60] sm:$0xff]   ;;  %v2038_v29 = vld [vmem:[#allocation9 + $0x28] sm:$0xff]  }
  0x8c   :  { %455 = vmatpush1.bf16.msra.mxu1 %v1895_v33  ;;  %v2036_v24 = vld [vmem:[#allocation9 + $0x20] sm:$0xff]   ;;  %v2369_v27 = vld [vmem:[#allocation4] sm:$0x1f] }
  0x8d   :  { %416 = vmatpush1.bf16.msra.mxu0 %v1874_v25  ;;  %456 = vmatprep.subr.bf16.mxu1 %v1896_v34  ;;  %v170_v25 = vsub.s32 0, %v2366_v22 }
  0x8e   :  { %1766 = vmatprep.subr.bf16.mxu0 %v2212_v32 }
  0x8f   :  { %v171_v30 = vrot.slane %v2369_v27, %v170_v25 }
  0x90   :  { %434 = vmatmul.mubr.bf16.vlgmr.msra.gmra.mrb[0].mxu0 %v2351_v28  ;;  %457 = vmatpush1.bf16.msra.mxu1 %v1898_v36 }
  0x91   :  { %1767 = vmatpush3.bf16.msra.mxu0 %v1899_v31  ;;  %1782 = vmatprep.mubr.msk.bf16.mxu0 %vm2213_vm0, %v2212_v32 }
  0x92   :  { %1768 = vmatprep.subr.bf16.mxu0 %v2212_v32  ;;  %1025 = vmatprep.subr.bf16.mxu1 %v1909_v38 }
  0x93   :  { %475 = vmatmul.mubr.bf16.vlgmr.msra.gmra.mrb[0].mxu1 %v2351_v28 }
  0x94   :  { %1026 = vmatpush1.bf16.msra.mxu1 %v1907_v40 }
  0x95   :  { %1769 = vmatpush3.bf16.msra.mxu0 %v1900_v35  ;;  %1027 = vmatprep.subr.bf16.mxu1 %v1912_v41  ;;  %v182_v41 = vsub.s32 3, %v2366_v22 }
  0x96   :  { %1770 = vmatprep.subr.bf16.mxu0 %v2212_v32 }
  0x98   :  { %1028 = vmatpush1.bf16.msra.mxu1 %v1910_v43  ;;  %v1955_v43 = vld [vmem:[#allocation6 + $0x100] ss:$8 sps:$4 sm:$0xff]  }
  0x99   :  { %1771 = vmatpush3.bf16.msra.mxu0 %v1901_v37  ;;  %1029 = vmatprep.subr.bf16.mxu1 %v1915_v44 }
  0x9a   :  { %1772 = vmatprep.subr.bf16.mxu0 %v2212_v32 }
  0x9c   :  { %1030 = vmatpush1.bf16.msra.mxu1 %v1913_v45  ;;  %v1960_v45 = vld [vmem:[#allocation6 + $0x114] ss:$8 sps:$4 sm:$0xff]  }
  0x9d   :  { %1773 = vmatpush3.bf16.msra.mxu0 %v1902_v39  ;;  %1031 = vmatprep.subr.bf16.mxu1 %v1918_v47  ;;  %v1958_v47 = vld [vmem:[#allocation6 + $0x110] ss:$8 sps:$4 sm:$0xff]  }
  0x9e   :  { %1774 = vmatprep.subr.bf16.mxu0 %v2212_v32 }
  0xa0   :  { %1032 = vmatpush1.bf16.msra.mxu1 %v1916_v48  ;;  %v1963_v48 = vld [vmem:[#allocation6 + $0x124] ss:$8 sps:$4 sm:$0xff]  }
  0xa1   :  { %1775 = vmatpush3.bf16.msra.mxu0 %v1903_v42  ;;  %1033 = vmatprep.subr.bf16.mxu1 %v1921_v50 }
  0xa2   :  { %1776 = vmatprep.subr.bf16.mxu0 %v2212_v32 }
  0xa4   :  { %1034 = vmatpush1.bf16.msra.mxu1 %v1919_v51 }
  0xa5   :  { %1777 = vmatpush3.bf16.msra.mxu0 %v1904_v46  ;;  %1035 = vmatprep.subr.bf16.mxu1 %v1924_v53  ;;  %v183_v46 = vrot.slane %v2369_v27, %v182_v41  ;;  %v1961_v53 = vld [vmem:[#allocation6 + $0x120] ss:$8 sps:$4 sm:$0xff]   ;;  %v2012_v41 = vld [vmem:[#allocation6 + $0x230] ss:$8 sps:$4 sm:$0xff]  }
  0xa6   :  { %1778 = vmatprep.subr.bf16.mxu0 %v2212_v32 }
  0xa8   :  { %1036 = vmatpush1.bf16.msra.mxu1 %v1922_v54 }
  0xa9   :  { %1779 = vmatpush3.bf16.msra.mxu0 %v1905_v49  ;;  %1037 = vmatprep.subr.bf16.mxu1 %v1927_v55  ;;  %v1966_v55 = vld [vmem:[#allocation6 + $0x134] ss:$8 sps:$4 sm:$0xff]  }
  0xaa   :  { %1780 = vmatprep.subr.bf16.mxu0 %v2212_v32 }
  0xac   :  { %1038 = vmatpush1.bf16.msra.mxu1 %v1925_v56 }
  0xad   :  { %1781 = vmatpush3.bf16.msra.mxu0 %v1906_v52  ;;  %1039 = vmatprep.subr.bf16.mxu1 %v1930_v57 }
  0xae   :  { %1726 = vmatprep.subr.bf16.mxu0 %v2027_v13  ;;  %v1985_v13 = vld [vmem:[#allocation6 + $0x1a0] ss:$8 sps:$4 sm:$0xff]  }
  0xb0   :  { %1783 = vmatmul.mubr.bf16.vlgmr.msra.gmra.mrb[4].mxu0 %v2351_v28  ;;  %1040 = vmatpush1.bf16.msra.mxu1 %v1928_v58  ;;  %v174_v28 = vsub.s32 1, %v2366_v22  ;;  %v1964_v58 = vld [vmem:[#allocation6 + $0x130] ss:$8 sps:$4 sm:$0xff]  }
  0xb1   :  { %1041 = vmatprep.subr.bf16.mxu1 %v1933_v59  ;;  %1727 = vmatpush3.bf16.msra.mxu0 %v2028_v14  ;;  %v1969_v59 = vld [vmem:[#allocation6 + $0x144] ss:$8 sps:$4 sm:$0xff]   ;;  %v1990_v14 = vld [vmem:[#allocation6 + $0x1b4] ss:$8 sps:$4 sm:$0xff]  }
  0xb2   :  { %1728 = vmatprep.subr.bf16.mxu0 %v2029_v15  ;;  %v175_v31 = vrot.slane %v2369_v27, %v174_v28  ;;  %v1988_v15 = vld [vmem:[#allocation6 + $0x1b0] ss:$8 sps:$4 sm:$0xff]  }
  0xb4   :  { %1042 = vmatpush1.bf16.msra.mxu1 %v1931_v60  ;;  %v1967_v60 = vld [vmem:[#allocation6 + $0x140] ss:$8 sps:$4 sm:$0xff]  }
  0xb5   :  { %1043 = vmatprep.subr.bf16.mxu1 %v1936_v61  ;;  %1729 = vmatpush3.bf16.msra.mxu0 %v2030_v16  ;;  %v1972_v61 = vld [vmem:[#allocation6 + $0x154] ss:$8 sps:$4 sm:$0xff]   ;;  %v1993_v16 = vld [vmem:[#allocation6 + $0x1c4] ss:$8 sps:$4 sm:$0xff]  }
  0xb6   :  { %1730 = vmatprep.subr.bf16.mxu0 %v2031_v17  ;;  %v178_v17 = vsub.s32 2, %v2366_v22 }
  0xb8   :  { %1044 = vmatpush1.bf16.msra.mxu1 %v1934_v62  ;;  %v1970_v62 = vld [vmem:[#allocation6 + $0x150] ss:$8 sps:$4 sm:$0xff]  }
  0xb9   :  { %1045 = vmatprep.subr.bf16.mxu1 %v1939_v63  ;;  %1731 = vmatpush3.bf16.msra.mxu0 %v2032_v18  ;;  %v1975_v63 = vld [vmem:[#allocation6 + $0x164] ss:$8 sps:$4 sm:$0xff]   ;;  %v1991_v18 = vld [vmem:[#allocation6 + $0x1c0] ss:$8 sps:$4 sm:$0xff]  }
  0xba   :  { %1732 = vmatprep.subr.bf16.mxu0 %v2033_v20  ;;  %v179_v20 = vrot.slane %v2369_v27, %v178_v17 }
  0xbc   :  { %1046 = vmatpush1.bf16.msra.mxu1 %v1937_v1  ;;  %v1973_v1 = vld [vmem:[#allocation6 + $0x160] ss:$8 sps:$4 sm:$0xff]  }
  0xbd   :  { %1047 = vmatprep.subr.bf16.mxu1 %v1942_v2  ;;  %1733 = vmatpush3.bf16.msra.mxu0 %v2034_v21  ;;  %v1978_v2 = vld [vmem:[#allocation6 + $0x174] ss:$8 sps:$4 sm:$0xff]   ;;  %v1994_v21 = vld [vmem:[#allocation6 + $0x1d0] ss:$8 sps:$4 sm:$0xff]  }
  0xbe   :  { %1734 = vmatprep.subr.bf16.mxu0 %v2035_v23  ;;  %v1999_v23 = vld [vmem:[#allocation6 + $0x1e4] ss:$8 sps:$4 sm:$0xff]  }
  0xc0   :  { %1048 = vmatpush1.bf16.msra.mxu1 %v1940_v3 }
  0xc1   :  { %1049 = vmatprep.subr.bf16.mxu1 %v1945_v4  ;;  %1735 = vmatpush3.bf16.msra.mxu0 %v2036_v24 }
  0xc2   :  { %1736 = vmatprep.subr.bf16.mxu0 %v2037_v26  ;;  %v1997_v26 = vld [vmem:[#allocation6 + $0x1e0] ss:$8 sps:$4 sm:$0xff]  }
  0xc4   :  { %1050 = vmatpush1.bf16.msra.mxu1 %v1943_v5  ;;  %v1976_v5 = vld [vmem:[#allocation6 + $0x170] ss:$8 sps:$4 sm:$0xff]  }
  0xc5   :  { %1051 = vmatprep.subr.bf16.mxu1 %v1948_v6  ;;  %1737 = vmatpush3.bf16.msra.mxu0 %v2038_v29  ;;  %v2002_v29 = vld [vmem:[#allocation6 + $0x1f4] ss:$8 sps:$4 sm:$0xff]  }
  0xc8   :  { %1052 = vmatpush1.bf16.msra.mxu1 %v1946_v7  ;;  %v1981_v7 = vld [vmem:[#allocation6 + $0x184] ss:$8 sps:$4 sm:$0xff]  }
  0xc9   :  { %1053 = vmatprep.subr.bf16.mxu1 %v1951_v8 }
  0xcc   :  { %1054 = vmatpush1.bf16.msra.mxu1 %v1949_v9  ;;  %v1979_v9 = vld [vmem:[#allocation6 + $0x180] ss:$8 sps:$4 sm:$0xff]  }
  0xcd   :  { %1055 = vmatprep.subr.bf16.mxu1 %v1954_v10  ;;  %v1984_v10 = vld [vmem:[#allocation6 + $0x194] ss:$8 sps:$4 sm:$0xff]  }
  0xd0   :  { %1056 = vmatpush1.bf16.msra.mxu1 %v1952_v11  ;;  %v1982_v11 = vld [vmem:[#allocation6 + $0x190] ss:$8 sps:$4 sm:$0xff]  }
  0xd1   :  { %1066 = vmatprep.subr.bf16.mxu1 %v1957_v12  ;;  %v1987_v12 = vld [vmem:[#allocation6 + $0x1a4] ss:$8 sps:$4 sm:$0xff]  }
 0x163   :  { %v435_v33 = vpop.f32.mrb[0].mxu0 }
 0x164   :  { %v436_v34 = vadd.f32 %v435_v33, %v171_v30  ;;  %v437_v35 = vpop.f32.mrb[1].mxu0  ;;  %v2005_v33 = vld [vmem:[#allocation6 + $0x204] ss:$8 sps:$4 sm:$0xff]  }
 0x165   :  { %v438_v36 = vadd.f32 %v437_v35, %v175_v31  ;;  %v439_v37 = vpop.f32.mrb[2].mxu0  ;;  %v2000_v31 = vld [vmem:[#allocation6 + $0x1f0] ss:$8 sps:$4 sm:$0xff]   ;;  %v2003_v35 = vld [vmem:[#allocation6 + $0x200] ss:$8 sps:$4 sm:$0xff]  }
 0x166   :  { %v523_v38 = vmax.f32 %v436_v34, 0.0  ;;  %v440_v39 = vpop.f32.mrb[3].mxu0  ;;  %v476_v49 = vpop.f32.mrb[0].mxu1  ;;  %v2006_v37 = vld [vmem:[#allocation6 + $0x210] ss:$8 sps:$4 sm:$0xff]  }
 0x167   :  { %v524_v40 = vmax.f32 %v438_v36, 0.0  ;;  %v478_v50 = vpop.f32.mrb[1].mxu1  ;;  %v477_v24 = vadd.f32 %v476_v49, %v179_v20  ;;  %v2008_v36 = vld [vmem:[#allocation6 + $0x214] ss:$8 sps:$4 sm:$0xff]   ;;  %v2009_v39 = vld [vmem:[#allocation6 + $0x220] ss:$8 sps:$4 sm:$0xff]  }
 0x168   :  { %v528_v44 = vpack.c.bf16 %v523_v38, %v523_v38  ;;  %v479_v51 = vadd.f32 %v478_v50, %v183_v46  ;;  %v480_v52 = vpop.f32.mrb[2].mxu1  ;;  %v2011_v38 = vld [vmem:[#allocation6 + $0x224] ss:$8 sps:$4 sm:$0xff]   ;;  %v2021_v49 = vld [vmem:[#allocation6 + $0x260] ss:$8 sps:$4 sm:$0xff]  }
 0x169   :  { %v529_v42 = vpack.c.bf16 %v524_v40, %v524_v40  ;;  %v481_v54 = vpop.f32.mrb[3].mxu1  ;;  %v525_v30 = vmax.f32 %v477_v24, 0.0  ;;  %v2014_v40 = vld [vmem:[#allocation6 + $0x234] ss:$8 sps:$4 sm:$0xff]   ;;  %v2024_v52 = vld [vmem:[#allocation6 + $0x270] ss:$8 sps:$4 sm:$0xff]  }
 0x16a   :  { %v526_v56 = vmax.f32 %v479_v51, 0.0  ;;  %v2026_v50 = vld [vmem:[#allocation6 + $0x274] ss:$8 sps:$4 sm:$0xff]   ;;  %v2051_v20 = vld [vmem:[#allocation10] sm:$0xff]  }
 0x16b   :  { %1057 = vmatprep.mubr.bf16.mxu1 %v529_v42  ;;  %v530_v34 = vpack.c.bf16 %v525_v30, %v525_v30  ;;  %v2017_v42 = vld [vmem:[#allocation6 + $0x244] ss:$8 sps:$4 sm:$0xff]   ;;  %v2039_v54 = vld [vmem:[#allocation9 + $0x70] sm:$0xff]  }
 0x16c   :  { %1058 = vmatmul.mubr.bf16.vlgmr.msra.gmra.mrb[4].mxu1 %v528_v44  ;;  %v531_v57 = vpack.c.bf16 %v526_v56, %v526_v56  ;;  %v2015_v44 = vld [vmem:[#allocation6 + $0x240] ss:$8 sps:$4 sm:$0xff]   ;;  %1738 = vmatprep.subr.bf16.mxu0 %v2039_v54  ;;  %v2053_v24 = vld [vmem:[#allocation10 + $0x10] sm:$0xff]  }
 0x16d   :  { %1067 = vmatpush1.bf16.msra.mxu1 %v1955_v43  ;;  %v186_v43 = vsub.s32 4, %v2366_v22  ;;  %v2042_v56 = vld [vmem:[#allocation9 + $0x38] sm:$0xff]   ;;  %v2044_v22 = vld [vmem:[%s2455_s7 + $0x8] sm:$0xff]   ;;  %v2056_v30 = vld [vmem:[#allocation10 + $0x28] sm:$0xff]  }
 0x16e   :  { %1068 = vmatprep.subr.bf16.mxu1 %v1960_v45  ;;  %1098 = vmatprep.mubr.bf16.mxu1 %v531_v57  ;;  %v2020_v45 = vld [vmem:[#allocation6 + $0x254] ss:$8 sps:$4 sm:$0xff]   ;;  %v613_v57 = vld [vmem:[#allocation7] sm:$0x3] }
 0x16f   :  { %v187_v46 = vrot.slane %v2369_v27, %v186_v43  ;;  %v2041_v27 = vld [vmem:[#allocation9 + $0x78] sm:$0xff]  }
 0x171   :  { %1069 = vmatpush1.bf16.msra.mxu1 %v1958_v47  ;;  %v2023_v47 = vld [vmem:[#allocation6 + $0x264] ss:$8 sps:$4 sm:$0xff]  }
 0x172   :  { %1070 = vmatprep.subr.bf16.mxu1 %v1963_v48 }
 0x175   :  { %1071 = vmatpush1.bf16.msra.mxu1 %v1961_v53 }
 0x176   :  { %1072 = vmatprep.subr.bf16.mxu1 %v1966_v55  ;;  %v2040_v55 = vld [vmem:[#allocation9 + $0x30] sm:$0xff]  }
 0x177   :  { %1739 = vmatpush3.bf16.msra.mxu0 %v2040_v55 }
 0x178   :  { %1740 = vmatprep.subr.bf16.mxu0 %v2041_v27 }
 0x179   :  { %1073 = vmatpush1.bf16.msra.mxu1 %v1964_v58  ;;  %v618_v58 = vrot.slane %v613_v57, %v170_v25  ;;  %v2045_v25 = vld [vmem:[%s2455_s7 + $0x10] sm:$0xff]  }
 0x17a   :  { %1074 = vmatprep.subr.bf16.mxu1 %v1969_v59  ;;  %v622_v59 = vrot.slane %v613_v57, %v174_v28  ;;  %v2046_v28 = vld [vmem:[%s2455_s7 + $0x18] sm:$0xff]  }
 0x17b   :  { %1741 = vmatpush3.bf16.msra.mxu0 %v2042_v56 }
 0x17c   :  { %1786 = vmatprep.subr.bf16.mxu0 %v2212_v32 }
 0x17d   :  { %1075 = vmatpush1.bf16.msra.mxu1 %v1967_v60 }
 0x17e   :  { %1076 = vmatprep.subr.bf16.mxu1 %v1972_v61 }
 0x181   :  { %1077 = vmatpush1.bf16.msra.mxu1 %v1970_v62 }
 0x182   :  { %1078 = vmatprep.subr.bf16.mxu1 %v1975_v63 }
 0x183   :  { %v2380_v3 = vpop.f32.mrb[4].mxu0 }
 0x184   :  { %v1784_v4 = vpop.f32.mrb[5].mxu0  ;;  %v518_v48 = vadd.f32 %v2380_v3, %v187_v46 }
 0x185   :  { %1079 = vmatpush1.bf16.msra.mxu1 %v1973_v1  ;;  %v520_v6 = vpop.f32.mrb[6].mxu0 }
 0x186   :  { %1080 = vmatprep.subr.bf16.mxu1 %v1978_v2  ;;  %v1785_v8 = vpop.f32.mrb[7].mxu0  ;;  %v527_v51 = vmax.f32 %v518_v48, 0.0  ;;  %v2043_v6 = vld [vmem:[%s2455_s7] sm:$0xff]  }
 0x187   :  { %v2047_v8 = vld [vmem:[%s2455_s7 + $0x20] sm:$0xff]  }
 0x188   :  { %v532_v53 = vpack.c.bf16 %v527_v51, %v527_v51 }
 0x189   :  { %1081 = vmatpush1.bf16.msra.mxu1 %v1976_v5 }
 0x18a   :  { %1082 = vmatprep.subr.bf16.mxu1 %v1981_v7 }
 0x18d   :  { %1083 = vmatpush1.bf16.msra.mxu1 %v1979_v9  ;;  %v2048_v9 = vld [vmem:[%s2455_s7 + $0x28] sm:$0xff]  }
 0x18e   :  { %1084 = vmatprep.subr.bf16.mxu1 %v1984_v10  ;;  %v2049_v10 = vld [vmem:[%s2455_s7 + $0x30] sm:$0xff]  }
 0x191   :  { %1085 = vmatpush1.bf16.msra.mxu1 %v1982_v11  ;;  %v2050_v11 = vld [vmem:[%s2455_s7 + $0x38] sm:$0xff]  }
 0x192   :  { %1086 = vmatprep.subr.bf16.mxu1 %v1987_v12 }
 0x195   :  { %1087 = vmatpush1.bf16.msra.mxu1 %v1985_v13  ;;  %v1682_v13 = vld [vmem:[%s2454_s6] ss:$0 sm:$0xff] }
 0x196   :  { %1088 = vmatprep.subr.bf16.mxu1 %v1990_v14 }
 0x199   :  { %1089 = vmatpush1.bf16.msra.mxu1 %v1988_v15 }
 0x19a   :  { %1090 = vmatprep.subr.bf16.mxu1 %v1993_v16 }
 0x19d   :  { %1091 = vmatpush1.bf16.msra.mxu1 %v1991_v18 }
 0x19e   :  { %1092 = vmatprep.subr.bf16.mxu1 %v1996_v19 }
 0x1a1   :  { %1093 = vmatpush1.bf16.msra.mxu1 %v1994_v21 }
 0x1a2   :  { %1094 = vmatprep.subr.bf16.mxu1 %v1999_v23  ;;  %v2052_v23 = vld [vmem:[#allocation10 + $0x8] sm:$0xff]  }
 0x1a5   :  { %1095 = vmatpush1.bf16.msra.mxu1 %v1997_v26  ;;  %v2054_v26 = vld [vmem:[#allocation10 + $0x18] sm:$0xff]  }
 0x1a6   :  { %1096 = vmatprep.subr.bf16.mxu1 %v2002_v29  ;;  %v2055_v29 = vld [vmem:[#allocation10 + $0x20] sm:$0xff]  }
 0x1a9   :  { %1097 = vmatpush1.bf16.msra.mxu1 %v2000_v31  ;;  %v2057_v31 = vld [vmem:[#allocation10 + $0x30] sm:$0xff]  }
 0x1aa   :  { %1107 = vmatprep.subr.bf16.mxu1 %v2005_v33  ;;  %v2058_v33 = vld [vmem:[#allocation10 + $0x38] sm:$0xff]  }
 0x1ac   :  { %1099 = vmatmul.mubr.bf16.vlgmr.msra.gmra.mrb[4].mxu1 %v530_v34  ;;  %v1699_v34 = vld [vmem:[%s2456_s8] ss:$0 sm:$0xff] }
 0x1ad   :  { %1108 = vmatpush1.bf16.msra.mxu1 %v2003_v35  ;;  %1139 = vmatprep.mubr.bf16.mxu1 %v2211_v0  ;;  %v2018_v0 = vld [vmem:[#allocation6 + $0x250] ss:$8 sps:$4 sm:$0xff]  }
 0x1ae   :  { %1109 = vmatprep.subr.bf16.mxu1 %v2008_v36 }
 0x1b1   :  { %1110 = vmatpush1.bf16.msra.mxu1 %v2006_v37 }
 0x1b2   :  { %1111 = vmatprep.subr.bf16.mxu1 %v2011_v38 }
 0x1b5   :  { %1112 = vmatpush1.bf16.msra.mxu1 %v2009_v39 }
 0x1b6   :  { %1113 = vmatprep.subr.bf16.mxu1 %v2014_v40 }
 0x1b9   :  { %1114 = vmatpush1.bf16.msra.mxu1 %v2012_v41 }
 0x1ba   :  { %1115 = vmatprep.subr.bf16.mxu1 %v2017_v42  ;;  %v1708_v42 = vld [vmem:[%s2458_s10] ss:$0 sm:$0xff] }
 0x1bd   :  { %1116 = vmatpush1.bf16.msra.mxu1 %v2015_v44 }
 0x1be   :  { %1117 = vmatprep.subr.bf16.mxu1 %v2020_v45 }
 0x1c1   :  { %1118 = vmatpush1.bf16.msra.mxu1 %v2018_v0 }
 0x1c2   :  { %1119 = vmatprep.subr.bf16.mxu1 %v2023_v47 }
 0x1c5   :  { %1120 = vmatpush1.bf16.msra.mxu1 %v2021_v49 }
 0x1c6   :  { %1121 = vmatprep.subr.bf16.mxu1 %v2026_v50 }
 0x1c9   :  { %1122 = vmatpush1.bf16.msra.mxu1 %v2024_v52 }
 0x1cc   :  { %1140 = vmatmul.mubr.bf16.vlgmr.msra.gmra.mrb[4].mxu1 %v532_v53 }
 0x29f   :  { %v1141_v60 = vpop.f32.mrb[4].mxu1 }
 0x2a0   :  { %v1826_v61 = vadd.f32 %v1141_v60, %v618_v58  ;;  %v1143_v62 = vpop.f32.mrb[5].mxu1 }
 0x2a1   :  { %v1827_v63 = vadd.f32 %v1143_v62, %v622_v59  ;;  %v1145_v1 = vpop.f32.mrb[6].mxu1 }
 0x2a2   :  { %v1148_v2 = vmax.f32 %v1826_v61, 0.0  ;;  %v1146_v3 = vpop.f32.mrb[7].mxu1 }
 0x2a3   :  { %v1149_v4 = vmax.f32 %v1827_v63, 0.0 }
 0x2a4   :  { %v1150_v7 = vpack.c.bf16 %v1148_v2, %v1148_v2 }
 0x2a5   :  { %v1151_v5 = vpack.c.bf16 %v1149_v4, %v1149_v4 }
 0x2a7   :  { %1319 = vmatprep.mubr.bf16.mxu0 %v1151_v5 }
 0x2a8   :  { %1320 = vmatmul.mubr.bf16.vlgmr.msra.gmra.mrb[8].mxu0 %v1150_v7 }
 0x2a9   :  { %1787 = vmatpush3.bf16.msra.mxu0 %v2043_v6  ;;  %1802 = vmatprep.mubr.msk.bf16.mxu0 %vm2213_vm0, %v2212_v32 }
 0x2aa   :  { %1788 = vmatprep.subr.bf16.mxu0 %v2212_v32 }
 0x2ad   :  { %1789 = vmatpush3.bf16.msra.mxu0 %v2044_v22 }
 0x2ae   :  { %1790 = vmatprep.subr.bf16.mxu0 %v2212_v32 }
 0x2b1   :  { %1791 = vmatpush3.bf16.msra.mxu0 %v2045_v25 }
 0x2b2   :  { %1792 = vmatprep.subr.bf16.mxu0 %v2212_v32 }
 0x2b5   :  { %1793 = vmatpush3.bf16.msra.mxu0 %v2046_v28 }
 0x2b6   :  { %1794 = vmatprep.subr.bf16.mxu0 %v2212_v32 }
 0x2b9   :  { %1795 = vmatpush3.bf16.msra.mxu0 %v2047_v8 }
 0x2ba   :  { %1796 = vmatprep.subr.bf16.mxu0 %v2212_v32 }
 0x2bd   :  { %1797 = vmatpush3.bf16.msra.mxu0 %v2048_v9 }
 0x2be   :  { %1798 = vmatprep.subr.bf16.mxu0 %v2212_v32 }
 0x2c1   :  { %1799 = vmatpush3.bf16.msra.mxu0 %v2049_v10 }
 0x2c2   :  { %1800 = vmatprep.subr.bf16.mxu0 %v2212_v32 }
 0x2c5   :  { %1801 = vmatpush3.bf16.msra.mxu0 %v2050_v11 }
 0x2c6   :  { %1806 = vmatprep.subr.bf16.mxu0 %v2212_v32 }
 0x37b   :  { %v1742_v12 = vpop.f32.mrb[8].mxu0 }
 0x37c   :  { %v1743_v14 = vpop.f32.mrb[9].mxu0 }
 0x37d   :  { %v1744_v15 = vadd.f32 %v1743_v14, %v1742_v12  ;;  %v1745_v16 = vpop.f32.mrb[10].mxu0 }
 0x37e   :  { %v1746_v17 = vpop.f32.mrb[11].mxu0 }
 0x37f   :  { %v1322_v18 = vadd.f32 %v1744_v15, %v1682_v13 }
 0x381   :  { %v1327_v19 = vmax.f32 %v1322_v18, 0.0 }
 0x383   :  { %v1328_v21 = vpack.c.bf16 %v1327_v19, %v1327_v19 }
 0x385   :  { %1803 = vmatmul.mubr.bf16.vlgmr.msra.gmra.mrb[12].mxu0 %v1328_v21 }
 0x386   :  { %1807 = vmatpush3.bf16.msra.mxu0 %v2051_v20  ;;  %1822 = vmatprep.mubr.msk.bf16.mxu0 %vm2213_vm0, %v2212_v32 }
 0x387   :  { %1808 = vmatprep.subr.bf16.mxu0 %v2212_v32 }
 0x38a   :  { %1809 = vmatpush3.bf16.msra.mxu0 %v2052_v23 }
 0x38b   :  { %1810 = vmatprep.subr.bf16.mxu0 %v2212_v32 }
 0x38e   :  { %1811 = vmatpush3.bf16.msra.mxu0 %v2053_v24 }
 0x38f   :  { %1812 = vmatprep.subr.bf16.mxu0 %v2212_v32 }
 0x392   :  { %1813 = vmatpush3.bf16.msra.mxu0 %v2054_v26 }
 0x393   :  { %1814 = vmatprep.subr.bf16.mxu0 %v2212_v32 }
 0x396   :  { %1815 = vmatpush3.bf16.msra.mxu0 %v2055_v29 }
 0x397   :  { %1816 = vmatprep.subr.bf16.mxu0 %v2212_v32 }
 0x39a   :  { %1817 = vmatpush3.bf16.msra.mxu0 %v2056_v30 }
 0x39b   :  { %1818 = vmatprep.subr.bf16.mxu0 %v2212_v32 }
 0x39e   :  { %1819 = vmatpush3.bf16.msra.mxu0 %v2057_v31 }
 0x39f   :  { %1820 = vmatprep.subr.bf16.mxu0 %v2212_v32 }
 0x3a2   :  { %1821 = vmatpush3.bf16.msra.mxu0 %v2058_v33 }
 0x458   :  { %v1434_v35 = vpop.f32.mrb[12].mxu0 }
 0x459   :  { %v1435_v36 = vadd.f32 %v1699_v34, %v1434_v35  ;;  %v1804_v37 = vpop.f32.mrb[13].mxu0 }
 0x45a   :  { %v1437_v38 = vpop.f32.mrb[14].mxu0 }
 0x45b   :  { %v1440_v39 = vmax.f32 %v1435_v36, 0.0  ;;  %v1805_v40 = vpop.f32.mrb[15].mxu0 }
 0x45d   :  { %v1441_v41 = vpack.c.bf16 %v1440_v39, %v1440_v39 }
 0x45f   :  { %1823 = vmatmul.mubr.bf16.vlgmr.msra.gmra.mrb[16].mxu0 %v1441_v41 }
 0x532   :  { %v1547_v43 = vpop.f32.mrb[16].mxu0 }
 0x533   :  { %v1548_v32 = vadd.f32 %v1708_v42, %v1547_v43  ;;  %v1824_v44 = vpop.f32.mrb[17].mxu0 }
 0x534   :  { %v1550_v45 = vpop.f32.mrb[18].mxu0 }
 0x535   :  { %1553 = vst [vmem:[%s2459_s11] sm:$0xff] %v1548_v32  ;;  %v1825_v46 = vpop.f32.mrb[19].mxu0 }
 0x536   :  { %1558 = vsyncpa [#allocation3], 1 }
 0x537   :  { %1559 = vsyncpa [#allocation5], 1 }
 0x538   :  { %1560 = vsyncpa [#allocation8], 1 }
 0x539   :  { %1561 = vsyncpa [#allocation11], 1 }

</bundles_post_ra>
